<compile_context>
chip_gen: v5e
topology: v5e:2x2
jax: 0.10.0
libtpu: 0.0.40
codegen_flags: <defaults>
</compile_context>

<pallas_src>
import functools

import jax
import jax.numpy as jnp
import numpy as np
from jax.experimental import pallas as pl
from jax.experimental.pallas import tpu as pltpu


def _round_up(x: int, m: int) -> int:
    return (x + m - 1) // m * m


# --------------------------------------------------------------------------
# Kernels.  Weight arrives pre-transposed as [D_in, D_out]; bias as (1, D_out)
# f32.  Features are cast to the compute dtype inside the kernel (no extra
# HBM pass in the wrapper).
# --------------------------------------------------------------------------
def _linear_fused_kernel(x_ref, w_ref, b_ref, o_ref, *, compute_dtype):
    """Whole K in one step: o = x @ w + b.  No accumulator, no pl.when."""
    acc = jnp.dot(x_ref[...].astype(compute_dtype), w_ref[...],
                  preferred_element_type=jnp.float32)
    o_ref[...] = (acc + b_ref[...]).astype(o_ref.dtype)


def _linear_acc_out_kernel(x_ref, w_ref, b_ref, o_ref, *, compute_dtype):
    """Multi-K, f32 output: accumulate directly into the resident output tile."""
    k = pl.program_id(2)

    @pl.when(k == 0)
    def _():
        o_ref[...] = jnp.zeros_like(o_ref)

    o_ref[...] += jnp.dot(x_ref[...].astype(compute_dtype), w_ref[...],
                          preferred_element_type=jnp.float32)

    @pl.when(k == pl.num_programs(2) - 1)
    def _():
        o_ref[...] += b_ref[...]          # bias only once, in the epilogue


def _linear_acc_scratch_kernel(x_ref, w_ref, b_ref, o_ref, acc_ref, *, compute_dtype):
    """Multi-K, non-f32 output: f32 VMEM scratch accumulator, cast in epilogue."""
    k = pl.program_id(2)

    @pl.when(k == 0)
    def _():
        acc_ref[...] = jnp.zeros_like(acc_ref)

    acc_ref[...] += jnp.dot(x_ref[...].astype(compute_dtype), w_ref[...],
                            preferred_element_type=jnp.float32)

    @pl.when(k == pl.num_programs(2) - 1)
    def _():
        o_ref[...] = (acc_ref[...] + b_ref[...]).astype(o_ref.dtype)


# --------------------------------------------------------------------------
# Wrapper.
# --------------------------------------------------------------------------
def flexte_linear_forward(
    tensors,
    weight,
    bias,
    *,
    tm: int = 512,
    tn: int = 512,
    tk: int = 1024,
    compute_dtype=None,
):
    """Pallas equivalent of FlexTELinearLayer.forward (dropout=False path).

    tensors: [features (N, D_in), treatments (N, 1)]
    weight : (D_out, D_in)  -- PyTorch nn.Linear layout
    bias   : (D_out,)
    compute_dtype: optional matmul operand dtype (e.g. jnp.bfloat16 for ~2x MXU
        throughput on all generations).  Accumulation is always f32; the output
        keeps the features dtype.  Default = features dtype (matches nn.Linear
        numerics exactly).
    Returns [linear_out (N, D_out), treatments].
    """
    if len(tensors) != 2:
        raise ValueError(
            "Invalid number of tensor for the FlexLinearLayer layer. It requires "
            "the features vector and the treatments vector"
        )
    features, treatments = tensors
    n, d_in = features.shape
    d_out, d_in_w = weight.shape
    assert d_in == d_in_w, "weight/feature dim mismatch"

    out_dtype = features.dtype
    cd = np.dtype(compute_dtype) if compute_dtype is not None else np.dtype(features.dtype)

    # Sublane alignment for the M axis: 8 rows for 4-byte, 16 for 2-byte,
    # 32 for 1-byte dtypes -> neither x loads nor o stores are sublane-masked.
    def _sub(dt):
        return max(8, 32 // np.dtype(dt).itemsize)

    sublane = max(_sub(features.dtype), _sub(out_dtype))

    # ---------------- tile selection ----------------
    # M axis.
    n_al = _round_up(n, sublane)
    if n_al <= tm:
        tm = n_al                      # whole M in one tile
    else:
        tm = _round_up(tm, sublane)
    n_p = _round_up(n, tm)

    # N (d_out) axis: collapse when it fits (features streamed from HBM once);
    # otherwise 256-aligned tiles for the 2x256x256 MXU (v6e/v7x).
    d_out_al = _round_up(d_out, 128)
    if d_out_al <= tn:
        tn = d_out_al
    else:
        tn = _round_up(tn, 256) if tn >= 256 else _round_up(tn, 128)
    d_out_p = _round_up(d_out, tn)

    # K (d_in) axis: collapse when it fits -> no accumulator at all.
    d_in_al = _round_up(d_in, 128)
    if d_in_al <= tk:
        tk = d_in_al
    else:
        tk = _round_up(tk, 256) if tk >= 256 else _round_up(tk, 128)
    d_in_p = _round_up(d_in, tk)
    k_steps = d_in_p // tk

    # v7x megacore: if both parallel axes collapsed to a single block but the
    # M tile is large enough to split cleanly, halve it so both TCs get work.
    if (n_p // tm == 1 and d_out_p // tn == 1 and tm >= 256
            and (tm // 2) % sublane == 0):
        tm //= 2

    grid_mn = (n_p // tm, d_out_p // tn)

    # ---------------- host-side data prep (minimal) ----------------
    # Features: only touched if zero-padding is required; cast happens in-kernel.
    x = features
    if (n_p, d_in_p) != (n, d_in):
        x = jnp.pad(x, ((0, n_p - n), (0, d_in_p - d_in)))

    # Weight: one-time transpose to [D_in, D_out] + cast + pad (tiny matrix,
    # amortized over every M tile) -> standard MXU-native contraction.
    w = weight.T.astype(cd)
    if (d_in_p, d_out_p) != (d_in, d_out):
        w = jnp.pad(w, ((0, d_in_p - d_in), (0, d_out_p - d_out)))

    b = bias.astype(jnp.float32).reshape(1, d_out)
    if d_out_p != d_out:
        b = jnp.pad(b, ((0, 0), (0, d_out_p - d_out)))

    # ---------------- VMEM budget + cost hint ----------------
    f32_out = np.dtype(out_dtype) == np.dtype(np.float32)
    x_tile_b = tm * tk * x.dtype.itemsize
    w_tile_b = tk * tn * w.dtype.itemsize
    o_tile_b = tm * tn * np.dtype(out_dtype).itemsize
    acc_b = tm * tn * 4 if (k_steps > 1 and not f32_out) else 0
    working_set = 2 * (x_tile_b + w_tile_b + o_tile_b + tn * 4) + acc_b
    # Headroom, but stay well under v7x's 64 MiB physical VMEM per TC.
    vmem_limit = int(min(48 << 20, max(32 << 20, 2 * working_set)))

    cost = pl.CostEstimate(
        flops=int(2 * n_p * d_out_p * d_in_p),
        transcendentals=0,
        bytes_accessed=int(
            grid_mn[1] * n_p * d_in_p * x.dtype.itemsize       # features per j pass
            + grid_mn[0] * d_in_p * d_out_p * w.dtype.itemsize  # weights per i pass
            + n_p * d_out_p * np.dtype(out_dtype).itemsize
            + d_out_p * 4
        ),
    )

    # ---------------- grid spec ----------------
    jcd = jnp.dtype(cd)
    if k_steps == 1:
        kernel = functools.partial(_linear_fused_kernel, compute_dtype=jcd)
        grid_spec = pltpu.PrefetchScalarGridSpec(
            num_scalar_prefetch=0,
            grid=grid_mn,
            in_specs=[
                pl.BlockSpec((tm, tk), lambda i, j: (i, 0)),   # features tile
                pl.BlockSpec((tk, tn), lambda i, j: (0, j)),   # weight tile [K, N]
                pl.BlockSpec((1, tn), lambda i, j: (0, j)),    # bias tile
            ],
            out_specs=pl.BlockSpec((tm, tn), lambda i, j: (i, j)),
        )
        dim_sem = ("parallel", "parallel")
    else:
        kernel = functools.partial(
            _linear_acc_out_kernel if f32_out else _linear_acc_scratch_kernel,
            compute_dtype=jcd,
        )
        grid_spec = pltpu.PrefetchScalarGridSpec(
            num_scalar_prefetch=0,
            grid=(*grid_mn, k_steps),
            in_specs=[
                pl.BlockSpec((tm, tk), lambda i, j, k: (i, k)),
                pl.BlockSpec((tk, tn), lambda i, j, k: (k, j)),
                pl.BlockSpec((1, tn), lambda i, j, k: (0, j)),
            ],
            out_specs=pl.BlockSpec((tm, tn), lambda i, j, k: (i, j)),
            scratch_shapes=() if f32_out else (pltpu.VMEM((tm, tn), jnp.float32),),
        )
        dim_sem = ("parallel", "parallel", "arbitrary")

    out = pl.pallas_call(
        kernel,
        out_shape=jax.ShapeDtypeStruct((n_p, d_out_p), out_dtype),
        grid_spec=grid_spec,
        compiler_params=pltpu.CompilerParams(
            dimension_semantics=dim_sem,
            vmem_limit_bytes=vmem_limit,
        ),
        cost_estimate=cost,
    )(x, w, b)

    if (n_p, d_out_p) != (n, d_out):
        out = out[:n, :d_out]

    # TODO(synk): training-mode dropout (dropout=True path) not implemented;
    # module default is dropout=False (identity), which is what we reproduce.
    return [out, treatments]


# --------------------------------------------------------------------------
# Self-test.
# --------------------------------------------------------------------------
def _check(out_feat, out_treat, features, treatments, weight, bias, rtol, atol, tag):
    f = np.asarray(features).astype(np.float64)
    w = np.asarray(weight).astype(np.float64)
    b = np.asarray(bias).astype(np.float64)
    ref = f @ w.T + b
    got = np.asarray(out_feat).astype(np.float64)
    np.testing.assert_allclose(got, ref, rtol=rtol, atol=atol,
                               err_msg=f"mismatch vs reference ({tag})")
    assert np.array_equal(np.asarray(out_treat), np.asarray(treatments)), (
        f"treatments must pass through unchanged ({tag})")


def _make_case(key, n, d_in, d_out, dtype=jnp.float32):
    k_x, k_t, k_w, k_b = jax.random.split(key, 4)
    bound = 1.0 / float(np.sqrt(d_in))
    weight = jax.random.uniform(k_w, (d_out, d_in), jnp.float32, -bound, bound).astype(dtype)
    bias = jax.random.uniform(k_b, (d_out,), jnp.float32, -bound, bound).astype(jnp.float32)
    features = jax.random.normal(k_x, (n, d_in), jnp.float32).astype(dtype)
    treatments = (jax.random.uniform(k_t, (n, 1)) > 0.5).astype(jnp.float32)
    return features, treatments, weight, bias


if __name__ == "__main__":
    key = jax.random.PRNGKey(0)
    k1, k2, k3 = jax.random.split(key, 3)

    # --- Case 1: small, non-aligned shapes -> padding + fused (K collapsed) --
    features, treatments, weight, bias = _make_case(k1, 8, 32, 16)
    o_f, o_t = flexte_linear_forward([features, treatments], weight, bias)
    jax.block_until_ready(o_f)
    jax.block_until_ready(o_t)
    _check(o_f, o_t, features, treatments, weight, bias, 1e-4, 1e-4, "small-f32-fused")

    # --- Case 2: default tiles -> j and K collapsed, features read once ------
    features, treatments, weight, bias = _make_case(k2, 256, 512, 256)
    o_f, o_t = flexte_linear_forward([features, treatments], weight, bias)
    jax.block_until_ready(o_f)
    _check(o_f, o_t, features, treatments, weight, bias, 5e-3, 5e-3, "fused-f32")

    # --- Case 3: forced small tiles -> 3-D grid, f32 accumulate-into-output --
    o_f, o_t = flexte_linear_forward([features, treatments], weight, bias,
                                     tm=128, tn=128, tk=128)
    jax.block_until_ready(o_f)
    _check(o_f, o_t, features, treatments, weight, bias, 5e-3, 5e-3, "tiled-f32-accout")

    # --- Case 4: bf16 inputs + bf16 compute -> 3-D grid with f32 scratch -----
    features_bf, treatments_bf, weight_bf, bias_bf = _make_case(
        k3, 256, 512, 256, dtype=jnp.bfloat16)
    o_f, o_t = flexte_linear_forward([features_bf, treatments_bf], weight_bf, bias_bf,
                                     tm=128, tn=128, tk=128,
                                     compute_dtype=jnp.bfloat16)
    jax.block_until_ready(o_f)
    _check(o_f, o_t, features_bf, treatments_bf, weight_bf, bias_bf,
           5e-2, 5e-2, "tiled-bf16-scratch")

    print("KERNEL_OK")
</pallas_src>

<mosaic_0001>
module attributes {stable_mosaic.version = 11 : i64} {
  func.func @_linear_fused_kernel(%arg0: i32, %arg1: i32, %arg2: memref<8x128xf32, #tpu.memory_space<vmem>>, %arg3: memref<128x128xf32, #tpu.memory_space<vmem>>, %arg4: memref<1x128xf32, #tpu.memory_space<vmem>>, %arg5: memref<8x128xf32, #tpu.memory_space<vmem>>) attributes {dimension_semantics = [#tpu.dimension_semantics<parallel>, #tpu.dimension_semantics<parallel>], iteration_bounds = array<i64: 1, 1>, scalar_prefetch = 0 : i64, scratch_operands = 0 : i64, tpu.core_type = #tpu.core_type<tc>, window_params = [{transform_indices = @transform_0, window_bounds = array<i64: 8, 128>}, {transform_indices = @transform_1, window_bounds = array<i64: 128, 128>}, {transform_indices = @transform_2, window_bounds = array<i64: 1, 128>}, {transform_indices = @transform_3, window_bounds = array<i64: 8, 128>}]} {
    %c0 = arith.constant 0 : index
    %c0_0 = arith.constant 0 : index
    %0 = vector.load %arg2[%c0, %c0_0] : memref<8x128xf32, #tpu.memory_space<vmem>>, vector<8x128xf32>
    %c0_1 = arith.constant 0 : index
    %c0_2 = arith.constant 0 : index
    %1 = vector.load %arg3[%c0_1, %c0_2] : memref<128x128xf32, #tpu.memory_space<vmem>>, vector<128x128xf32>
    %cst = arith.constant dense<0.000000e+00> : vector<8x128xf32>
    %2 = tpu.matmul %0, %1, %cst {dimension_numbers = #tpu.dot_dimension_numbers<[1], [0], [0], [1], [0, 0, 1, 1], [], []>} : vector<8x128xf32>, vector<128x128xf32>, vector<8x128xf32> -> vector<8x128xf32>
    %c0_3 = arith.constant 0 : index
    %c0_4 = arith.constant 0 : index
    %3 = vector.load %arg4[%c0_3, %c0_4] : memref<1x128xf32, #tpu.memory_space<vmem>>, vector<1x128xf32>
    %4 = vector.broadcast %3 : vector<1x128xf32> to vector<8x128xf32>
    %5 = arith.addf %2, %4 : vector<8x128xf32>
    %c0_5 = arith.constant 0 : index
    %c0_6 = arith.constant 0 : index
    %6 = vector.load %arg5[%c0_5, %c0_6] : memref<8x128xf32, #tpu.memory_space<vmem>>, vector<8x128xf32>
    tpu.vector_store %arg5[%c0_5, %c0_6], %5 {strides = array<i32>} : memref<8x128xf32, #tpu.memory_space<vmem>>, vector<8x128xf32>,
    return
  }
  func.func @transform_0(%arg0: i32, %arg1: i32) -> (i32, i32) {
    %c0_i32 = arith.constant 0 : i32
    %c0_i32_0 = arith.constant 0 : i32
    return %arg0, %c0_i32 : i32, i32
  }
  func.func @transform_1(%arg0: i32, %arg1: i32) -> (i32, i32) {
    %c0_i32 = arith.constant 0 : i32
    %c0_i32_0 = arith.constant 0 : i32
    return %c0_i32, %arg1 : i32, i32
  }
  func.func @transform_2(%arg0: i32, %arg1: i32) -> (i32, i32) {
    %c0_i32 = arith.constant 0 : i32
    %c0_i32_0 = arith.constant 0 : i32
    return %c0_i32, %arg1 : i32, i32
  }
  func.func @transform_3(%arg0: i32, %arg1: i32) -> (i32, i32) {
    %c0_i32 = arith.constant 0 : i32
    return %arg0, %arg1 : i32, i32
  }
}

</mosaic_0001>

<bundles_post_ra>
// kernel: tpu_custom_call.1
= control target key start
LH: loop header
LB: loop body
LE: loop exit
PB: predicated region body
PF: predicated region fallthrough
CT: control target
= control target key end

     0   :  { %8 = vsyncpa [#allocation3], 0  ;;  %s226_s0 = inlined_call_operand.hbm [shape: f32[8,128], index: 0, kind: input, shape index: {}]   ;;  %s227_s1 = inlined_call_operand.hbm [shape: f32[128,128], index: 1, kind: input, shape index: {}]   ;;  %s228_s2 = inlined_call_operand.vmem [shape: f32[1,128], index: 2, kind: input, shape index: {}]   ;;  %s229_s3 = inlined_call_operand.hbm [shape: f32[8,128], index: 3, kind: output, shape index: {}]  }
   0x1   :  { %9 = vsyncpa [#allocation6], 0 }
   0x2   :  { %10 = vsyncpa [#allocation4], 0  ;;  %s16_s14 = sshll.u32 %s226_s0, 4  ;;  %s189_s15 = smov [#allocation2]   ;;  %s17_s14 = int_to_ptr.hbm [resolvable:$true] %s16_s14 }
   0x3   :  { %s18_s16 = sshll.u32 %s189_s15, 4  ;;  %s26_s19 = sshll.u32 %s227_s1, 4  ;;  %s19_s16 = int_to_ptr.vmem [resolvable:$true] %s18_s16  ;;  %s27_s19 = int_to_ptr.hbm [resolvable:$true] %s26_s19 }
   0x4   :  { %21 = dma.hbm_to_vmem [thread:$0]  %s17_s14, 128, %s19_s16, [#allocation3]  }
   0x5   :  { %s190_s20 = smov [#allocation5]   ;;  %s191_s22 = smov 128  }
   0x6   :  { %s28_s21 = sshll.u32 %s190_s20, 4  ;;  %s192_s23 = smov 8   ;;  %s29_s21 = int_to_ptr.vmem [resolvable:$true] %s28_s21 }
   0x7   :  { %34 = dma.hbm_to_vmem [thread:$0]  %s27_s19, 2048, %s29_s21, [#allocation6], %s191_s22, %s191_s22, %s192_s23  }
   0x8   :  { %183 = dma.done.wait [#allocation3], 128  }
   0x9   :  { %184 = vsyncadd [#allocation3], 4294967168 }
   0xa   :  { %185 = dma.done.wait [#allocation6], 2048  }
   0xb   :  { %186 = vsyncadd [#allocation6], 4294965248  ;;  %v61_v0 = vld [vmem:[#allocation5 + $0x78] sm:$0xff]  ;;  %v60_v1 = vld [vmem:[#allocation5 + $0x70] sm:$0xff]  ;;  %s193_s24 = smov [#allocation7]   ;;  %s94_s28 = sshll.u32 %s229_s3, 4  ;;  %s95_s28 = int_to_ptr.hbm [resolvable:$true] %s94_s28 }
   0xc   :  { %66 = vmatpush.msra.mxu0 %v61_v0  ;;  %v59_v2 = vld [vmem:[#allocation5 + $0x68] sm:$0xff]  ;;  %v58_v3 = vld [vmem:[#allocation5 + $0x60] sm:$0xff]  ;;  %v57_v4 = vld [vmem:[#allocation5 + $0x58] sm:$0xff]  ;;  %s92_s25 = sshll.u32 %s193_s24, 4  ;;  %s93_s25 = int_to_ptr.vmem [resolvable:$true] %s92_s25 }
   0xd   :  { %v56_v5 = vld [vmem:[#allocation5 + $0x50] sm:$0xff]  ;;  %v55_v6 = vld [vmem:[#allocation5 + $0x48] sm:$0xff]  ;;  %v54_v7 = vld [vmem:[#allocation5 + $0x40] sm:$0xff] }
   0xe   :  { %67 = vmatpush.msra.mxu0 %v60_v1  ;;  %v53_v8 = vld [vmem:[#allocation5 + $0x38] sm:$0xff]  ;;  %v52_v9 = vld [vmem:[#allocation5 + $0x30] sm:$0xff]  ;;  %v51_v10 = vld [vmem:[#allocation5 + $0x28] sm:$0xff] }
   0xf   :  { %v50_v11 = vld [vmem:[#allocation5 + $0x20] sm:$0xff]  ;;  %v49_v12 = vld [vmem:[#allocation5 + $0x18] sm:$0xff]  ;;  %v48_v13 = vld [vmem:[#allocation5 + $0x10] sm:$0xff] }
  0x10   :  { %68 = vmatpush.msra.mxu0 %v59_v2  ;;  %v47_v14 = vld [vmem:[#allocation5 + $0x8] sm:$0xff]  ;;  %v46_v15 = vld [vmem:[#allocation5] sm:$0xff]  ;;  %v45_v16 = vld [vmem:[#allocation2] sm:$0xff] }
  0x11   :  { %v110_v17 = vld [vmem:[%s228_s2] ss:$0 sm:$0xff] }
  0x12   :  { %69 = vmatpush.msra.mxu0 %v58_v3 }
  0x14   :  { %70 = vmatpush.msra.mxu0 %v57_v4 }
  0x16   :  { %71 = vmatpush.msra.mxu0 %v56_v5 }
  0x18   :  { %72 = vmatpush.msra.mxu0 %v55_v6 }
  0x1a   :  { %73 = vmatpush.msra.mxu0 %v54_v7 }
  0x1c   :  { %74 = vmatpush.msra.mxu0 %v53_v8 }
  0x1e   :  { %75 = vmatpush.msra.mxu0 %v52_v9 }
  0x20   :  { %76 = vmatpush.msra.mxu0 %v51_v10 }
  0x22   :  { %77 = vmatpush.msra.mxu0 %v50_v11 }
  0x24   :  { %78 = vmatpush.msra.mxu0 %v49_v12 }
  0x26   :  { %79 = vmatpush.msra.mxu0 %v48_v13 }
  0x28   :  { %80 = vmatpush.msra.mxu0 %v47_v14 }
  0x2a   :  { %81 = vmatpush.msra.mxu0 %v46_v15 }
  0x2b   :  { %82 = vmatmul.f32.vlgmr.msra.gmra.mxu0 %v45_v16 }
  0xa8   :  { %v83_v18 = vpop.f32.mrf.mxu0 }
  0xa9   :  { %v84_v19 = vadd.f32 %v110_v17, %v83_v18 }
  0xab   :  { %86 = vst [vmem:[#allocation7] sm:$0xff] %v84_v19 }
  0xac   :  { %97 = dma.vmem_to_hbm [thread:$0]  %s93_s25, 128, %s95_s28, [#allocation4]  }
  0xad   :  { %187 = dma.done.wait [#allocation4], 128  }
  0xae   :  { %188 = vsyncadd [#allocation4], 4294967168 }
  0xaf   :  { %102 = vsyncpa [#allocation3], 1 }
  0xb0   :  { %103 = vsyncpa [#allocation6], 1 }
  0xb1   :  { %104 = vsyncpa [#allocation4], 1 }

</bundles_post_ra>
